<compile_context>
chip_gen: v7x
topology: tpu7x:2x2x1
jax: 0.10.0
libtpu: 0.0.40
codegen_flags: <defaults>
</compile_context>

<pallas_src>
import functools

import jax
import jax.numpy as jnp
from jax.experimental import pallas as pl
from jax.experimental.pallas import tpu as pltpu

# Sobel filters, identical to SpatialGradients defaults (conv2d = cross-correlation).
F_X = ((-1.0, 0.0, 1.0), (-2.0, 0.0, 2.0), (-1.0, 0.0, 1.0))
F_Y = ((-1.0, -2.0, -1.0), (0.0, 0.0, 0.0), (1.0, 2.0, 1.0))
GRAY_W = (0.2989, 0.587, 0.114)


# ----------------------- in-kernel zero-fill shifts (flat spatial axis) ----------------
def _shift_hi(v, k):
    """result[:, f] = v[:, f - k] for f >= k, else 0 (data moves toward higher index)."""
    rows, n = v.shape
    return jnp.concatenate([jnp.zeros((rows, k), v.dtype), v[:, : n - k]], axis=1)


def _shift_lo(v, k):
    """result[:, f] = v[:, f + k] for f < n - k, else 0 (data moves toward lower index)."""
    rows, n = v.shape
    return jnp.concatenate([v[:, k:], jnp.zeros((rows, k), v.dtype)], axis=1)


def _sobel_flat(v, not_first_col, not_last_col, W):
    """3x3 Sobel with zero padding on planes flattened to (rows, H*W), separable form.

    gx[i,j] = s1[i,j+1] - s1[i,j-1],   s1 = x[i-1,:] + 2 x[i,:] + x[i+1,:]
    gy[i,j] = s2[i,j-1] + 2 s2[i,j] + s2[i,j+1],   s2 = x[i+1,:] - x[i-1,:]
    Vertical neighbours are +-W on the flat axis (the zero-fill shifts also provide the
    zero padding of the first/last image row); horizontal neighbours are +-1 with the
    column-boundary bool masks zeroing values that would wrap across a row boundary.
    """
    vu = _shift_hi(v, W)                       # x[i-1, j]
    vd = _shift_lo(v, W)                       # x[i+1, j]
    s1 = vu + 2.0 * v + vd
    s2 = vd - vu
    s1l = jnp.where(not_first_col, _shift_hi(s1, 1), 0.0)   # s1[i, j-1]
    s1r = jnp.where(not_last_col, _shift_lo(s1, 1), 0.0)    # s1[i, j+1]
    s2l = jnp.where(not_first_col, _shift_hi(s2, 1), 0.0)
    s2r = jnp.where(not_last_col, _shift_lo(s2, 1), 0.0)
    gx = s1r - s1l
    gy = s2l + 2.0 * s2 + s2r
    return gx, gy


# ------------- fused kernel: SpatialGradients + mask threshold + T ADMM iterations -----
def _admm_fused_kernel(*refs, W, HW, th_scale, eta, T, use_mask, inline_col):
    idx = 0
    flow_ref = refs[idx]; idx += 1
    gray_ref = None
    if use_mask:
        gray_ref = refs[idx]; idx += 1
    col_ref = None
    if not inline_col:
        col_ref = refs[idx]; idx += 1
    q_ref, c_ref, beta_ref = refs[idx], refs[idx + 1], refs[idx + 2]

    x = flow_ref[0]                            # (R, HW): B_TILE*Cf flow rows, flat space

    # Column-boundary masks (bool, broadcast over the sublane rows).
    if inline_col:                             # W is a power of two -> no aux input
        lane = jax.lax.broadcasted_iota(jnp.int32, (1, HW), 1)
        col = lane & (W - 1)
    else:                                      # general W: single-row int32 column index
        col = col_ref[0]                       # (1, HW)
    not_first_col = col != 0
    not_last_col = col != (W - 1)

    # C = Sobel gradients of every flow row.
    cx, cy = _sobel_flat(x, not_first_col, not_last_col, W)        # each (R, HW)

    # Threshold th = exp(-|Sobel(gray)|) * lamb / rho.  gray arrives already replicated
    # per flow channel (same row layout as flow), so th broadcasts with zero reshuffles.
    if use_mask:
        g = gray_ref[0]                        # (R, HW)
        ggx, ggy = _sobel_flat(g, not_first_col, not_last_col, W)
        th_x = jnp.exp(-jnp.abs(ggx)) * th_scale
        th_y = jnp.exp(-jnp.abs(ggy)) * th_scale
    else:
        th_x = th_scale                        # mask=None branch: scalar lamb / rho
        th_y = th_scale

    def admm(c, th):
        # iteration 0 hoisted: beta == 0  =>  d == c
        q = c - jnp.clip(c, -th, th)           # == where(|d| >= th, d - th*sign(d), 0)
        beta = eta * (q - c)
        for _ in range(T - 1):                 # T static & small
            d = c - beta
            q = d - jnp.clip(d, -th, th)
            beta = beta + eta * (q - c)
        return q, beta

    qx, bx = admm(cx, th_x)
    qy, by = admm(cy, th_y)

    # Dense stores: dx into lanes [0, HW), dy into lanes [HW, 2*HW).  With the output
    # HBM array shaped (G, B*Cf, 2*HW) this IS the PyTorch [c0_dx, c0_dy, c1_dx, ...]
    # channel interleave after a free wrapper reshape - no sublane shuffle, no masked
    # per-row stores.
    c_ref[0, :, 0:HW] = cx
    c_ref[0, :, HW:2 * HW] = cy
    q_ref[0, :, 0:HW] = qx
    q_ref[0, :, HW:2 * HW] = qy
    beta_ref[0, :, 0:HW] = bx
    beta_ref[0, :, HW:2 * HW] = by


# ------------------------------- MaskGenerator glue ------------------------------------
def _downsampled_gray(image):
    """(image+1)/2 -> bilinear 1/8 downsample -> grayscale weighted sum.

    F.interpolate(scale_factor=1/8, mode='bilinear', align_corners=False) for sizes
    divisible by 8 samples source coordinate 8*i + 3.5, i.e. the 0.25-weighted average
    of the 2x2 neighbourhood at rows/cols {8i+3, 8i+4}.
    """
    N, C, Hi, Wi = image.shape
    assert C == 3 and Hi % 8 == 0 and Wi % 8 == 0
    # TODO(synk): general (non multiple-of-8) bilinear resize path is not implemented.
    img = (image + 1.0) * 0.5
    ds = 0.25 * (img[:, :, 3::8, 3::8] + img[:, :, 3::8, 4::8]
                 + img[:, :, 4::8, 3::8] + img[:, :, 4::8, 4::8])
    w = jnp.array(GRAY_W, jnp.float32).reshape(1, 3, 1, 1)
    return jnp.sum(ds * w, axis=1, keepdims=True)            # (N, 1, Hi/8, Wi/8)


# --------------------------------- batch-tile chooser ----------------------------------
def _pick_b_tile(N, Cf, HW, use_mask, max_tile=8, vmem_budget=24 * 1024 * 1024):
    """Largest batch tile that divides N, keeps >= 2 grid steps (v7x megacore), fits a
    conservative per-step VMEM estimate, preferring 8-multiple row counts."""
    est_per_row = 160 * HW                     # bytes: blocks (double-buffered) + temps
    candidates = []
    for b in range(1, min(N, max_tile) + 1):
        if N % b:
            continue
        if N >= 2 and N // b < 2:
            continue                           # keep both v7x TensorCores busy
        if b * Cf * est_per_row > vmem_budget:
            continue
        candidates.append(b)
    if not candidates:
        return 1
    mult8 = [b for b in candidates if (b * Cf) % 8 == 0]
    return max(mult8) if mult8 else max(candidates)


# --------------------------------- ADMMSolverBlock -------------------------------------
def admm_solver_block(flow, image=None, *, use_mask=True, rho=1.0, lamb=0.4, eta=0.1, T=1):
    """ADMMSolverBlock.forward(F, image) -> (Q, C, beta), all float32 NCHW."""
    assert T >= 1
    N, Cf, H, W = flow.shape
    assert H >= 2 and W >= 2
    HW = H * W
    B = _pick_b_tile(N, Cf, HW, use_mask)
    G = N // B
    R = B * Cf                                 # flow rows per grid step

    flow_r = flow.astype(jnp.float32).reshape(G, R, HW)

    in_arrays = [flow_r]
    in_specs = [pl.BlockSpec((1, R, HW), lambda i: (i, 0, 0))]

    if use_mask:
        gray = _downsampled_gray(image)
        assert gray.shape[2:] == (H, W), "flow must live at 1/8 image resolution"
        # Replicate gray per flow channel in the wrapper so the kernel needs no sublane
        # repeat/reshape (costs Cf x gray reads, ~7% extra HBM traffic for Cf=2).
        gray_rep = jnp.broadcast_to(gray.astype(jnp.float32).reshape(N, 1, HW),
                                    (N, Cf, HW)).reshape(G, R, HW)
        in_arrays.append(gray_rep)
        in_specs.append(pl.BlockSpec((1, R, HW), lambda i: (i, 0, 0)))

    inline_col = (W & (W - 1)) == 0            # power-of-two W -> build masks in-kernel
    if not inline_col:
        col_idx = (jnp.arange(HW, dtype=jnp.int32) % W).reshape(1, 1, HW)
        in_arrays.append(col_idx)
        # Grid-invariant block: DMA'd once, reused across all steps.
        in_specs.append(pl.BlockSpec((1, 1, HW), lambda i: (0, 0, 0)))

    kernel = functools.partial(_admm_fused_kernel, W=W, HW=HW,
                               th_scale=float(lamb) / float(rho), eta=float(eta),
                               T=int(T), use_mask=bool(use_mask),
                               inline_col=bool(inline_col))

    out_sds = jax.ShapeDtypeStruct((G, R, 2 * HW), jnp.float32)
    out_block = pl.BlockSpec((1, R, 2 * HW), lambda i: (i, 0, 0))
    q, c, beta = pl.pallas_call(
        kernel,
        out_shape=(out_sds, out_sds, out_sds),
        grid_spec=pltpu.PrefetchScalarGridSpec(
            num_scalar_prefetch=0,
            grid=(G,),
            in_specs=in_specs,
            out_specs=(out_block, out_block, out_block),
        ),
        compiler_params=pltpu.CompilerParams(
            dimension_semantics=("parallel",),      # v7x: shard steps over both TCs
            vmem_limit_bytes=32 * 1024 * 1024,
        ),
    )(*in_arrays)

    # (G, B*Cf, 2*HW) -> (N, 2*Cf, H, W) is a pure metadata reshape (channel = 2c + parity).
    shape = (N, 2 * Cf, H, W)
    return q.reshape(shape), c.reshape(shape), beta.reshape(shape)


# ----------------------------- pure-JAX reference (checking) ---------------------------
def _reference(flow, image, *, use_mask, rho, lamb, eta, T):
    def sobel_nchw(x):
        N, C, H, W = x.shape
        xp = jnp.pad(x, ((0, 0), (0, 0), (1, 1), (1, 1)))
        gx = jnp.zeros_like(x)
        gy = jnp.zeros_like(x)
        for di in range(3):
            for dj in range(3):
                win = xp[:, :, di:di + H, dj:dj + W]
                gx = gx + F_X[di][dj] * win
                gy = gy + F_Y[di][dj] * win
        return jnp.stack([gx, gy], axis=2).reshape(N, 2 * C, H, W)

    C = sobel_nchw(flow)
    if use_mask:
        grads = sobel_nchw(_downsampled_gray(image))
        mask = jnp.exp(-jnp.abs(grads))
        th = jnp.tile(mask, (1, C.shape[1] // mask.shape[1], 1, 1)) * lamb / rho
    else:
        th = jnp.ones_like(C) * lamb / rho
    beta = jnp.zeros_like(C)
    Q = None
    for _ in range(T):
        d = C - beta
        Q = jnp.where(jnp.abs(d) >= th, d - th * jnp.sign(d), 0.0)
        beta = beta + eta * (Q - C)
    return Q, C, beta


def _check(out, ref):
    for a, b in zip(out, ref):
        assert a.shape == b.shape
        assert bool(jnp.allclose(a, b, atol=1e-4, rtol=1e-4))


if __name__ == "__main__":
    key = jax.random.PRNGKey(0)
    k1, k2, k3, k4, k5 = jax.random.split(key, 5)

    # --- Test A: masked path, power-of-two W (in-kernel column masks), T=2 -------------
    # Flow field lives at 1/8 of image resolution (so the mask and C shapes match).
    N, Hs, Ws = 2, 8, 8
    flow = jax.random.normal(k1, (N, 2, Hs, Ws), dtype=jnp.float32)
    image = jax.random.uniform(k2, (N, 3, 8 * Hs, 8 * Ws), dtype=jnp.float32,
                               minval=-1.0, maxval=1.0)
    out_a = admm_solver_block(flow, image, use_mask=True, rho=1.0, lamb=0.4, eta=0.1, T=2)
    jax.block_until_ready(out_a)
    assert out_a[0].shape == (N, 4, Hs, Ws)
    _check(out_a, _reference(flow, image, use_mask=True, rho=1.0, lamb=0.4, eta=0.1, T=2))

    # --- Test B: masked path, non-power-of-two W, B_TILE=2, T=3 ------------------------
    N2, Hs2, Ws2 = 4, 6, 10
    flow2 = jax.random.normal(k3, (N2, 2, Hs2, Ws2), dtype=jnp.float32)
    image2 = jax.random.uniform(k4, (N2, 3, 8 * Hs2, 8 * Ws2), dtype=jnp.float32,
                                minval=-1.0, maxval=1.0)
    out_b = admm_solver_block(flow2, image2, use_mask=True, rho=1.0, lamb=0.4, eta=0.1, T=3)
    jax.block_until_ready(out_b)
    _check(out_b, _reference(flow2, image2, use_mask=True, rho=1.0, lamb=0.4, eta=0.1, T=3))

    # --- Test C: mask-free path (scalar threshold), Cf=3, odd rows, T=1 ----------------
    flow3 = jax.random.normal(k5, (3, 3, 5, 12), dtype=jnp.float32)
    out_c = admm_solver_block(flow3, None, use_mask=False, rho=2.0, lamb=0.5, eta=0.2, T=1)
    jax.block_until_ready(out_c)
    _check(out_c, _reference(flow3, None, use_mask=False, rho=2.0, lamb=0.5, eta=0.2, T=1))

    print("KERNEL_OK")
</pallas_src>

<mosaic_0001>
module attributes {stable_mosaic.version = 11 : i64} {
  func.func @_admm_fused_kernel(%arg0: i32, %arg1: memref<1x2x64xf32, #tpu.memory_space<vmem>>, %arg2: memref<1x2x64xf32, #tpu.memory_space<vmem>>, %arg3: memref<1x2x128xf32, #tpu.memory_space<vmem>>, %arg4: memref<1x2x128xf32, #tpu.memory_space<vmem>>, %arg5: memref<1x2x128xf32, #tpu.memory_space<vmem>>) attributes {dimension_semantics = [#tpu.dimension_semantics<parallel>], iteration_bounds = array<i64: 2>, scalar_prefetch = 0 : i64, scratch_operands = 0 : i64, tpu.core_type = #tpu.core_type<tc>, window_params = [{transform_indices = @transform_0, window_bounds = array<i64: 1, 2, 64>}, {transform_indices = @transform_1, window_bounds = array<i64: 1, 2, 64>}, {transform_indices = @transform_2, window_bounds = array<i64: 1, 2, 128>}, {transform_indices = @transform_3, window_bounds = array<i64: 1, 2, 128>}, {transform_indices = @transform_4, window_bounds = array<i64: 1, 2, 128>}]} {
    %c0 = arith.constant 0 : index
    %c0_0 = arith.constant 0 : index
    %c0_1 = arith.constant 0 : index
    %0 = vector.load %arg1[%c0, %c0_0, %c0_1] : memref<1x2x64xf32, #tpu.memory_space<vmem>>, vector<1x2x64xf32>
    %1 = vector.shape_cast %0 : vector<1x2x64xf32> to vector<2x64xf32>
    %2 = tpu.iota {dimensions = array<i32: 1>} : vector<1x64xi32>
    %c7_i32 = arith.constant 7 : i32
    %3 = vector.broadcast %c7_i32 : i32 to vector<1x64xi32>
    %4 = arith.andi %2, %3 : vector<1x64xi32>
    %c0_i32 = arith.constant 0 : i32
    %5 = vector.broadcast %c0_i32 : i32 to vector<1x64xi32>
    %6 = arith.cmpi ne, %4, %5 : vector<1x64xi32>
    %c7_i32_2 = arith.constant 7 : i32
    %7 = vector.broadcast %c7_i32_2 : i32 to vector<1x64xi32>
    %8 = arith.cmpi ne, %4, %7 : vector<1x64xi32>
    %cst = arith.constant 0.000000e+00 : f32
    %9 = vector.broadcast %cst : f32 to vector<2x8xf32>
    %10 = vector.extract_strided_slice %1 {offsets = [0, 0], sizes = [2, 56], strides = [1, 1]} : vector<2x64xf32> to vector<2x56xf32>
    %11 = tpu.concatenate %9, %10 in 1 : vector<2x8xf32>, vector<2x56xf32> -> vector<2x64xf32>
    %12 = vector.extract_strided_slice %1 {offsets = [0, 8], sizes = [2, 56], strides = [1, 1]} : vector<2x64xf32> to vector<2x56xf32>
    %cst_3 = arith.constant 0.000000e+00 : f32
    %13 = vector.broadcast %cst_3 : f32 to vector<2x8xf32>
    %14 = tpu.concatenate %12, %13 in 1 : vector<2x56xf32>, vector<2x8xf32> -> vector<2x64xf32>
    %cst_4 = arith.constant 2.000000e+00 : f32
    %15 = vector.broadcast %cst_4 : f32 to vector<2x64xf32>
    %16 = arith.mulf %15, %1 : vector<2x64xf32>
    %17 = arith.addf %11, %16 : vector<2x64xf32>
    %18 = arith.addf %17, %14 : vector<2x64xf32>
    %19 = arith.subf %14, %11 : vector<2x64xf32>
    %cst_5 = arith.constant 0.000000e+00 : f32
    %20 = vector.broadcast %cst_5 : f32 to vector<2x1xf32>
    %21 = vector.extract_strided_slice %18 {offsets = [0, 0], sizes = [2, 63], strides = [1, 1]} : vector<2x64xf32> to vector<2x63xf32>
    %22 = tpu.concatenate %20, %21 in 1 : vector<2x1xf32>, vector<2x63xf32> -> vector<2x64xf32>
    %cst_6 = arith.constant 0.000000e+00 : f32
    %23 = vector.shape_cast %6 : vector<1x64xi1> to vector<1x64xi1>
    %24 = vector.broadcast %23 : vector<1x64xi1> to vector<2x64xi1>
    %25 = vector.broadcast %cst_6 : f32 to vector<2x64xf32>
    %26 = arith.select %24, %22, %25 : vector<2x64xi1>, vector<2x64xf32>
    %27 = vector.extract_strided_slice %18 {offsets = [0, 1], sizes = [2, 63], strides = [1, 1]} : vector<2x64xf32> to vector<2x63xf32>
    %cst_7 = arith.constant 0.000000e+00 : f32
    %28 = vector.broadcast %cst_7 : f32 to vector<2x1xf32>
    %29 = tpu.concatenate %27, %28 in 1 : vector<2x63xf32>, vector<2x1xf32> -> vector<2x64xf32>
    %cst_8 = arith.constant 0.000000e+00 : f32
    %30 = vector.shape_cast %8 : vector<1x64xi1> to vector<1x64xi1>
    %31 = vector.broadcast %30 : vector<1x64xi1> to vector<2x64xi1>
    %32 = vector.broadcast %cst_8 : f32 to vector<2x64xf32>
    %33 = arith.select %31, %29, %32 : vector<2x64xi1>, vector<2x64xf32>
    %cst_9 = arith.constant 0.000000e+00 : f32
    %34 = vector.broadcast %cst_9 : f32 to vector<2x1xf32>
    %35 = vector.extract_strided_slice %19 {offsets = [0, 0], sizes = [2, 63], strides = [1, 1]} : vector<2x64xf32> to vector<2x63xf32>
    %36 = tpu.concatenate %34, %35 in 1 : vector<2x1xf32>, vector<2x63xf32> -> vector<2x64xf32>
    %cst_10 = arith.constant 0.000000e+00 : f32
    %37 = vector.shape_cast %6 : vector<1x64xi1> to vector<1x64xi1>
    %38 = vector.broadcast %37 : vector<1x64xi1> to vector<2x64xi1>
    %39 = vector.broadcast %cst_10 : f32 to vector<2x64xf32>
    %40 = arith.select %38, %36, %39 : vector<2x64xi1>, vector<2x64xf32>
    %41 = vector.extract_strided_slice %19 {offsets = [0, 1], sizes = [2, 63], strides = [1, 1]} : vector<2x64xf32> to vector<2x63xf32>
    %cst_11 = arith.constant 0.000000e+00 : f32
    %42 = vector.broadcast %cst_11 : f32 to vector<2x1xf32>
    %43 = tpu.concatenate %41, %42 in 1 : vector<2x63xf32>, vector<2x1xf32> -> vector<2x64xf32>
    %cst_12 = arith.constant 0.000000e+00 : f32
    %44 = vector.shape_cast %8 : vector<1x64xi1> to vector<1x64xi1>
    %45 = vector.broadcast %44 : vector<1x64xi1> to vector<2x64xi1>
    %46 = vector.broadcast %cst_12 : f32 to vector<2x64xf32>
    %47 = arith.select %45, %43, %46 : vector<2x64xi1>, vector<2x64xf32>
    %48 = arith.subf %33, %26 : vector<2x64xf32>
    %cst_13 = arith.constant 2.000000e+00 : f32
    %49 = vector.broadcast %cst_13 : f32 to vector<2x64xf32>
    %50 = arith.mulf %49, %19 : vector<2x64xf32>
    %51 = arith.addf %40, %50 : vector<2x64xf32>
    %52 = arith.addf %51, %47 : vector<2x64xf32>
    %c0_14 = arith.constant 0 : index
    %c0_15 = arith.constant 0 : index
    %c0_16 = arith.constant 0 : index
    %53 = vector.load %arg2[%c0_14, %c0_15, %c0_16] : memref<1x2x64xf32, #tpu.memory_space<vmem>>, vector<1x2x64xf32>
    %54 = vector.shape_cast %53 : vector<1x2x64xf32> to vector<2x64xf32>
    %cst_17 = arith.constant 0.000000e+00 : f32
    %55 = vector.broadcast %cst_17 : f32 to vector<2x8xf32>
    %56 = vector.extract_strided_slice %54 {offsets = [0, 0], sizes = [2, 56], strides = [1, 1]} : vector<2x64xf32> to vector<2x56xf32>
    %57 = tpu.concatenate %55, %56 in 1 : vector<2x8xf32>, vector<2x56xf32> -> vector<2x64xf32>
    %58 = vector.extract_strided_slice %54 {offsets = [0, 8], sizes = [2, 56], strides = [1, 1]} : vector<2x64xf32> to vector<2x56xf32>
    %cst_18 = arith.constant 0.000000e+00 : f32
    %59 = vector.broadcast %cst_18 : f32 to vector<2x8xf32>
    %60 = tpu.concatenate %58, %59 in 1 : vector<2x56xf32>, vector<2x8xf32> -> vector<2x64xf32>
    %cst_19 = arith.constant 2.000000e+00 : f32
    %61 = vector.broadcast %cst_19 : f32 to vector<2x64xf32>
    %62 = arith.mulf %61, %54 : vector<2x64xf32>
    %63 = arith.addf %57, %62 : vector<2x64xf32>
    %64 = arith.addf %63, %60 : vector<2x64xf32>
    %65 = arith.subf %60, %57 : vector<2x64xf32>
    %cst_20 = arith.constant 0.000000e+00 : f32
    %66 = vector.broadcast %cst_20 : f32 to vector<2x1xf32>
    %67 = vector.extract_strided_slice %64 {offsets = [0, 0], sizes = [2, 63], strides = [1, 1]} : vector<2x64xf32> to vector<2x63xf32>
    %68 = tpu.concatenate %66, %67 in 1 : vector<2x1xf32>, vector<2x63xf32> -> vector<2x64xf32>
    %cst_21 = arith.constant 0.000000e+00 : f32
    %69 = vector.shape_cast %6 : vector<1x64xi1> to vector<1x64xi1>
    %70 = vector.broadcast %69 : vector<1x64xi1> to vector<2x64xi1>
    %71 = vector.broadcast %cst_21 : f32 to vector<2x64xf32>
    %72 = arith.select %70, %68, %71 : vector<2x64xi1>, vector<2x64xf32>
    %73 = vector.extract_strided_slice %64 {offsets = [0, 1], sizes = [2, 63], strides = [1, 1]} : vector<2x64xf32> to vector<2x63xf32>
    %cst_22 = arith.constant 0.000000e+00 : f32
    %74 = vector.broadcast %cst_22 : f32 to vector<2x1xf32>
    %75 = tpu.concatenate %73, %74 in 1 : vector<2x63xf32>, vector<2x1xf32> -> vector<2x64xf32>
    %cst_23 = arith.constant 0.000000e+00 : f32
    %76 = vector.shape_cast %8 : vector<1x64xi1> to vector<1x64xi1>
    %77 = vector.broadcast %76 : vector<1x64xi1> to vector<2x64xi1>
    %78 = vector.broadcast %cst_23 : f32 to vector<2x64xf32>
    %79 = arith.select %77, %75, %78 : vector<2x64xi1>, vector<2x64xf32>
    %cst_24 = arith.constant 0.000000e+00 : f32
    %80 = vector.broadcast %cst_24 : f32 to vector<2x1xf32>
    %81 = vector.extract_strided_slice %65 {offsets = [0, 0], sizes = [2, 63], strides = [1, 1]} : vector<2x64xf32> to vector<2x63xf32>
    %82 = tpu.concatenate %80, %81 in 1 : vector<2x1xf32>, vector<2x63xf32> -> vector<2x64xf32>
    %cst_25 = arith.constant 0.000000e+00 : f32
    %83 = vector.shape_cast %6 : vector<1x64xi1> to vector<1x64xi1>
    %84 = vector.broadcast %83 : vector<1x64xi1> to vector<2x64xi1>
    %85 = vector.broadcast %cst_25 : f32 to vector<2x64xf32>
    %86 = arith.select %84, %82, %85 : vector<2x64xi1>, vector<2x64xf32>
    %87 = vector.extract_strided_slice %65 {offsets = [0, 1], sizes = [2, 63], strides = [1, 1]} : vector<2x64xf32> to vector<2x63xf32>
    %cst_26 = arith.constant 0.000000e+00 : f32
    %88 = vector.broadcast %cst_26 : f32 to vector<2x1xf32>
    %89 = tpu.concatenate %87, %88 in 1 : vector<2x63xf32>, vector<2x1xf32> -> vector<2x64xf32>
    %cst_27 = arith.constant 0.000000e+00 : f32
    %90 = vector.shape_cast %8 : vector<1x64xi1> to vector<1x64xi1>
    %91 = vector.broadcast %90 : vector<1x64xi1> to vector<2x64xi1>
    %92 = vector.broadcast %cst_27 : f32 to vector<2x64xf32>
    %93 = arith.select %91, %89, %92 : vector<2x64xi1>, vector<2x64xf32>
    %94 = arith.subf %79, %72 : vector<2x64xf32>
    %cst_28 = arith.constant 2.000000e+00 : f32
    %95 = vector.broadcast %cst_28 : f32 to vector<2x64xf32>
    %96 = arith.mulf %95, %65 : vector<2x64xf32>
    %97 = arith.addf %86, %96 : vector<2x64xf32>
    %98 = arith.addf %97, %93 : vector<2x64xf32>
    %99 = math.absf %94 : vector<2x64xf32>
    %cst_29 = arith.constant 0.000000e+00 : f32
    %100 = vector.broadcast %cst_29 : f32 to vector<2x64xf32>
    %101 = arith.subf %100, %99 : vector<2x64xf32>
    %102 = math.exp %101 : vector<2x64xf32>
    %cst_30 = arith.constant 4.000000e-01 : f32
    %103 = vector.broadcast %cst_30 : f32 to vector<2x64xf32>
    %104 = arith.mulf %102, %103 : vector<2x64xf32>
    %105 = math.absf %98 : vector<2x64xf32>
    %cst_31 = arith.constant 0.000000e+00 : f32
    %106 = vector.broadcast %cst_31 : f32 to vector<2x64xf32>
    %107 = arith.subf %106, %105 : vector<2x64xf32>
    %108 = math.exp %107 : vector<2x64xf32>
    %cst_32 = arith.constant 4.000000e-01 : f32
    %109 = vector.broadcast %cst_32 : f32 to vector<2x64xf32>
    %110 = arith.mulf %108, %109 : vector<2x64xf32>
    %cst_33 = arith.constant 0.000000e+00 : f32
    %111 = vector.broadcast %cst_33 : f32 to vector<2x64xf32>
    %112 = arith.subf %111, %104 : vector<2x64xf32>
    %113 = arith.maximumf %112, %48 : vector<2x64xf32>
    %114 = arith.minimumf %104, %113 : vector<2x64xf32>
    %115 = arith.subf %48, %114 : vector<2x64xf32>
    %116 = arith.subf %115, %48 : vector<2x64xf32>
    %cst_34 = arith.constant 1.000000e-01 : f32
    %117 = vector.broadcast %cst_34 : f32 to vector<2x64xf32>
    %118 = arith.mulf %117, %116 : vector<2x64xf32>
    %119 = arith.subf %48, %118 : vector<2x64xf32>
    %cst_35 = arith.constant 0.000000e+00 : f32
    %120 = vector.broadcast %cst_35 : f32 to vector<2x64xf32>
    %121 = arith.subf %120, %104 : vector<2x64xf32>
    %122 = arith.maximumf %121, %119 : vector<2x64xf32>
    %123 = arith.minimumf %104, %122 : vector<2x64xf32>
    %124 = arith.subf %119, %123 : vector<2x64xf32>
    %125 = arith.subf %124, %48 : vector<2x64xf32>
    %cst_36 = arith.constant 1.000000e-01 : f32
    %126 = vector.broadcast %cst_36 : f32 to vector<2x64xf32>
    %127 = arith.mulf %126, %125 : vector<2x64xf32>
    %128 = arith.addf %118, %127 : vector<2x64xf32>
    %cst_37 = arith.constant 0.000000e+00 : f32
    %129 = vector.broadcast %cst_37 : f32 to vector<2x64xf32>
    %130 = arith.subf %129, %110 : vector<2x64xf32>
    %131 = arith.maximumf %130, %52 : vector<2x64xf32>
    %132 = arith.minimumf %110, %131 : vector<2x64xf32>
    %133 = arith.subf %52, %132 : vector<2x64xf32>
    %134 = arith.subf %133, %52 : vector<2x64xf32>
    %cst_38 = arith.constant 1.000000e-01 : f32
    %135 = vector.broadcast %cst_38 : f32 to vector<2x64xf32>
    %136 = arith.mulf %135, %134 : vector<2x64xf32>
    %137 = arith.subf %52, %136 : vector<2x64xf32>
    %cst_39 = arith.constant 0.000000e+00 : f32
    %138 = vector.broadcast %cst_39 : f32 to vector<2x64xf32>
    %139 = arith.subf %138, %110 : vector<2x64xf32>
    %140 = arith.maximumf %139, %137 : vector<2x64xf32>
    %141 = arith.minimumf %110, %140 : vector<2x64xf32>
    %142 = arith.subf %137, %141 : vector<2x64xf32>
    %143 = arith.subf %142, %52 : vector<2x64xf32>
    %cst_40 = arith.constant 1.000000e-01 : f32
    %144 = vector.broadcast %cst_40 : f32 to vector<2x64xf32>
    %145 = arith.mulf %144, %143 : vector<2x64xf32>
    %146 = arith.addf %136, %145 : vector<2x64xf32>
    %c0_41 = arith.constant 0 : index
    %c0_42 = arith.constant 0 : index
    %c0_43 = arith.constant 0 : index
    %147 = vector.load %arg4[%c0_41, %c0_42, %c0_43] : memref<1x2x128xf32, #tpu.memory_space<vmem>>, vector<1x2x64xf32>
    %148 = vector.shape_cast %147 : vector<1x2x64xf32> to vector<2x64xf32>
    %149 = vector.shape_cast %48 : vector<2x64xf32> to vector<1x2x64xf32>
    tpu.vector_store %arg4[%c0_41, %c0_42, %c0_43], %149 {strides = array<i32>} : memref<1x2x128xf32, #tpu.memory_space<vmem>>, vector<1x2x64xf32>,
    %c0_44 = arith.constant 0 : index
    %c0_45 = arith.constant 0 : index
    %c64 = arith.constant 64 : index
    %150 = vector.load %arg4[%c0_44, %c0_45, %c64] : memref<1x2x128xf32, #tpu.memory_space<vmem>>, vector<1x2x64xf32>
    %151 = vector.shape_cast %150 : vector<1x2x64xf32> to vector<2x64xf32>
    %152 = vector.shape_cast %52 : vector<2x64xf32> to vector<1x2x64xf32>
    tpu.vector_store %arg4[%c0_44, %c0_45, %c64], %152 {strides = array<i32>} : memref<1x2x128xf32, #tpu.memory_space<vmem>>, vector<1x2x64xf32>,
    %c0_46 = arith.constant 0 : index
    %c0_47 = arith.constant 0 : index
    %c0_48 = arith.constant 0 : index
    %153 = vector.load %arg3[%c0_46, %c0_47, %c0_48] : memref<1x2x128xf32, #tpu.memory_space<vmem>>, vector<1x2x64xf32>
    %154 = vector.shape_cast %153 : vector<1x2x64xf32> to vector<2x64xf32>
    %155 = vector.shape_cast %124 : vector<2x64xf32> to vector<1x2x64xf32>
    tpu.vector_store %arg3[%c0_46, %c0_47, %c0_48], %155 {strides = array<i32>} : memref<1x2x128xf32, #tpu.memory_space<vmem>>, vector<1x2x64xf32>,
    %c0_49 = arith.constant 0 : index
    %c0_50 = arith.constant 0 : index
    %c64_51 = arith.constant 64 : index
    %156 = vector.load %arg3[%c0_49, %c0_50, %c64_51] : memref<1x2x128xf32, #tpu.memory_space<vmem>>, vector<1x2x64xf32>
    %157 = vector.shape_cast %156 : vector<1x2x64xf32> to vector<2x64xf32>
    %158 = vector.shape_cast %142 : vector<2x64xf32> to vector<1x2x64xf32>
    tpu.vector_store %arg3[%c0_49, %c0_50, %c64_51], %158 {strides = array<i32>} : memref<1x2x128xf32, #tpu.memory_space<vmem>>, vector<1x2x64xf32>,
    %c0_52 = arith.constant 0 : index
    %c0_53 = arith.constant 0 : index
    %c0_54 = arith.constant 0 : index
    %159 = vector.load %arg5[%c0_52, %c0_53, %c0_54] : memref<1x2x128xf32, #tpu.memory_space<vmem>>, vector<1x2x64xf32>
    %160 = vector.shape_cast %159 : vector<1x2x64xf32> to vector<2x64xf32>
    %161 = vector.shape_cast %128 : vector<2x64xf32> to vector<1x2x64xf32>
    tpu.vector_store %arg5[%c0_52, %c0_53, %c0_54], %161 {strides = array<i32>} : memref<1x2x128xf32, #tpu.memory_space<vmem>>, vector<1x2x64xf32>,
    %c0_55 = arith.constant 0 : index
    %c0_56 = arith.constant 0 : index
    %c64_57 = arith.constant 64 : index
    %162 = vector.load %arg5[%c0_55, %c0_56, %c64_57] : memref<1x2x128xf32, #tpu.memory_space<vmem>>, vector<1x2x64xf32>
    %163 = vector.shape_cast %162 : vector<1x2x64xf32> to vector<2x64xf32>
    %164 = vector.shape_cast %146 : vector<2x64xf32> to vector<1x2x64xf32>
    tpu.vector_store %arg5[%c0_55, %c0_56, %c64_57], %164 {strides = array<i32>} : memref<1x2x128xf32, #tpu.memory_space<vmem>>, vector<1x2x64xf32>,
    return
  }
  func.func @transform_0(%arg0: i32) -> (i32, i32, i32) {
    %c0_i32 = arith.constant 0 : i32
    %c0_i32_0 = arith.constant 0 : i32
    %c0_i32_1 = arith.constant 0 : i32
    return %arg0, %c0_i32, %c0_i32_0 : i32, i32, i32
  }
  func.func @transform_1(%arg0: i32) -> (i32, i32, i32) {
    %c0_i32 = arith.constant 0 : i32
    %c0_i32_0 = arith.constant 0 : i32
    %c0_i32_1 = arith.constant 0 : i32
    return %arg0, %c0_i32, %c0_i32_0 : i32, i32, i32
  }
  func.func @transform_2(%arg0: i32) -> (i32, i32, i32) {
    %c0_i32 = arith.constant 0 : i32
    %c0_i32_0 = arith.constant 0 : i32
    %c0_i32_1 = arith.constant 0 : i32
    return %arg0, %c0_i32, %c0_i32_0 : i32, i32, i32
  }
  func.func @transform_3(%arg0: i32) -> (i32, i32, i32) {
    %c0_i32 = arith.constant 0 : i32
    %c0_i32_0 = arith.constant 0 : i32
    %c0_i32_1 = arith.constant 0 : i32
    return %arg0, %c0_i32, %c0_i32_0 : i32, i32, i32
  }
  func.func @transform_4(%arg0: i32) -> (i32, i32, i32) {
    %c0_i32 = arith.constant 0 : i32
    %c0_i32_0 = arith.constant 0 : i32
    %c0_i32_1 = arith.constant 0 : i32
    return %arg0, %c0_i32, %c0_i32_0 : i32, i32, i32
  }
}

</mosaic_0001>

<bundles_post_ra>
// kernel: tpu_custom_call.1
= control target key start
LH: loop header
LB: loop body
LE: loop exit
PB: predicated region body
PF: predicated region fallthrough
CT: control target
= control target key end

     0   :  { %10 = vsyncpa [#allocation3], 0  ;;  %s1283_s0 = inlined_call_operand.hbm [shape: f32[2,2,64], index: 0, kind: input, shape index: {}]   ;;  %s1284_s1 = inlined_call_operand.hbm [shape: f32[2,2,64], index: 1, kind: input, shape index: {}]   ;;  %s1285_s2 = inlined_call_operand.hbm [shape: f32[2,2,128], index: 2, kind: output, shape index: {0}]   ;;  %s1286_s3 = inlined_call_operand.hbm [shape: f32[2,2,128], index: 3, kind: output, shape index: {1}]   ;;  %s1287_s4 = inlined_call_operand.hbm [shape: f32[2,2,128], index: 4, kind: output, shape index: {2}]  }
   0x1   :  { %12 = vsyncpa [#allocation3 + $0x1], 0 }
   0x2   :  { %13 = vsyncpa [#allocation6], 0 }
   0x3   :  { %15 = vsyncpa [#allocation6 + $0x1], 0 }
   0x4   :  { %16 = vsyncpa [#allocation4], 0 }
   0x5   :  { %18 = vsyncpa [#allocation4 + $0x1], 0 }
   0x6   :  { %19 = vsyncpa [#allocation9], 0 }
   0x7   :  { %21 = vsyncpa [#allocation9 + $0x1], 0  ;;  %s939_s15 = smov 0   ;;  %s941_s16 = smov 0  }
   0x8   :  { %s943_s17 = smov 0   ;;  %s945_s18 = smov 0  }
   0x9 LB: > { %s960_s19 = sadd.s32 4294967295, %s902_s18   ;;  %s621_s20 = sadd.s32 4294967294, %s902_s18   ;;  %s902_s18 = sphi %s945_s18, %s1310_s18   ;;  %s898_s17 = sphi %s943_s17, %s1309_s17   ;;  %s894_s16 = sphi %s941_s16, %s1308_s16   ;;  %s890_s15 = sphi %s939_s15, %s1307_s15  }
   0xa   : > { %s964_s21 = sadd.s32 1, %s902_s18   ;;  %s34_s22 = sadd.s32 1, %s898_s17 }
   0xb   : > { %s31_s23 = ssub.s32 %s902_s18, %s964_s21  ;;  %p41_p0 = scmp.ne.s32.totalorder %s898_s17, %s894_s16 }
   0xc   : > { %p32_p1 = scmp.eq.s32.totalorder %s31_s23, 0  ;;  %p42_p2 = scmp.eq.s32.totalorder %s902_s18, 0 }
   0xd   : > { %p47_p3 = scmp.ne.s32.totalorder %s894_s16, %s890_s15  ;;  %p48_p4 = scmp.eq.s32.totalorder %s960_s19, 0 }
   0xe   : > { %s976_s24 = scalar_select %p32_p1, %s898_s17, %s34_s22  }
   0xf   : > { %p978_p5 = por %p42_p2, %p41_p0  ;;  %p982_p6 = por %p48_p4, %p47_p3 }
  0x10   : > { %p97_p7 = scmp.eq.s32.totalorder %s960_s19, 1  ;;  %p103_p8 = scmp.eq.s32.totalorder %s621_s20, 1 }
  0x11   : > { %s1291_s26 = scalar_select %p982_p6, 1, 0 }
  0x12   : > { %p669_p10 = scmp.lt.s32.totalorder %s902_s18, 2  ;;  %p991_p11 = por %p97_p7, %p41_p0 }
  0x13   : > { %p995_p12 = por %p103_p8, %p47_p3  ;;  %s1000_s29 = sand.u32 1, %s898_s17  }
  0x14   : > { %s1292_s27 = scalar_select %p991_p11, 1, 0 }
  0x15   : > { %s1293_s28 = scalar_select %p995_p12, 1, 0 }
  0x16   : > { %s625_s30 = sshll.u32 %s902_s18, 5  ;;  %s624_s5 = sshll.u32 %s1000_s29, 1 }
  0x17   : > { %s1009_s8 = scalar_lea.hbm %s1283_s0, %s625_s30  ;;  %s179_s9 = scalar_lea.vmem [#allocation2], %s624_s5 }
  0x18   : > { %s186_s10 = sshll.u32 %s179_s9, 4  ;;  %p1015_p13 = pnand %p669_p10, %p978_p5  ;;  %s1019_s10 = int_to_ptr.vmem [resolvable:$true] %s186_s10 }
  0x19   : > { %s176_s12 = scalar_lea.sflag [#allocation3], %s1000_s29  ;;  %s712_s13 = scalar_lea.hbm %s1009_s8, 32 }
  0x1a   : > { %p713_p2 = scmp.ne.s32.totalorder %s1009_s8, %s712_s13  ;;  %p714_p3 = pneg %p1015_p13 }
  0x1b   : > { %s717_s23 = scalar_lea.hbm %s1283_s0, 64  ;;  %p718_p5 = scmp.lt.u32.totalorder %s1009_s8, %s1283_s0 }
  0x1c   : > { %p715_p4 = pnand %p714_p3, %p713_p2  ;;  %p719_p8 = scmp.lt.u32.totalorder %s717_s23, %s712_s13 }
  0x1d   : > { %p721_p9 = scmp.lt.u32.totalorder %s712_s13, %s1009_s8 }
  0x1e   : > { %p716_p7 = pneg %p715_p4  ;;  %p720_p10 = por %p719_p8, %p718_p5 }
  0x20   : > { %p722_p0 = por %p721_p9, %p720_p10 }
  0x22   : > { %p723_p1 = pnand %p722_p0, %p716_p7 }
  0x24   : > { %726 = shalt.err (!%p723_p1)
}
  0x25   : > { %s727_s7 = scalar_lea.vmem %s1019_s10, 32  ;;  %s904_s9 = smov [#allocation2]  }
  0x26   : > { %p728_p2 = scmp.ne.s32.totalorder %s1019_s10, %s727_s7  ;;  %s732_s14 = sshll.u32 %s904_s9, 4  ;;  %s733_s14 = int_to_ptr.vmem [resolvable:$false] %s732_s14 }
  0x27   : > { %s734_s22 = scalar_lea.vmem %s733_s14, 64  ;;  %p735_p11 = scmp.lt.s32.totalorder %s1019_s10, %s733_s14 }
  0x28   : > { %p730_p4 = pnand %p728_p2, %p714_p3  ;;  %p736_p5 = scmp.lt.s32.totalorder %s734_s22, %s727_s7 }
  0x2a   : > { %p731_p12 = pneg %p730_p4  ;;  %p737_p8 = por %p736_p5, %p735_p11 }
  0x2c   : > { %p738_p9 = pnand %p737_p8, %p731_p12 }
  0x2e   : > { %741 = shalt.err (!%p738_p9)
}
  0x2f   : > { %655 = dma.hbm_to_vmem [thread:$0]  (!%p1015_p13), %s1009_s8, 32, %s1019_s10, %s176_s12  }
  0x30   : > { %p1295_p0 = scmp.lt.s32.totalorder %s902_s18, 3  ;;  %p1296_p1 = scmp.ge.s32.totalorder %s902_s18, 1 }
  0x31   : > { %s1062_s6 = scalar_lea.hbm %s1284_s1, %s625_s30  ;;  %s197_s7 = scalar_lea.vmem [#allocation5], %s624_s5 }
  0x32   : > { %p1053_p7 = pnand %p1296_p1, %p1295_p0  ;;  %s204_s9 = sshll.u32 %s197_s7, 4  ;;  %s205_s9 = int_to_ptr.vmem [resolvable:$true] %s204_s9 }
  0x33   : > { %s194_s8 = scalar_lea.sflag [#allocation6], %s1000_s29  ;;  %s742_s10 = scalar_lea.hbm %s1062_s6, 32 }
  0x34   : > { %s1297_s13 = scalar_select %p1053_p7, 1, 0 }
  0x35   : > { %p743_p11 = scmp.ne.s32.totalorder %s1062_s6, %s742_s10  ;;  %s747_s30 = scalar_lea.hbm %s1284_s1, 64 }
  0x36   : > { %p748_p2 = scmp.lt.u32.totalorder %s1062_s6, %s1284_s1  ;;  %p749_p4 = scmp.lt.u32.totalorder %s747_s30, %s742_s10 }
  0x37   : > { %p745_p12 = pnand %p743_p11, %p714_p3  ;;  %p751_p8 = scmp.lt.u32.totalorder %s742_s10, %s1062_s6 }
  0x38   : > { %p750_p5 = por %p749_p4, %p748_p2 }
  0x39   : > { %p746_p10 = pneg %p745_p12 }
  0x3a   : > { %p752_p9 = por %p751_p8, %p750_p5 }
  0x3c   : > { %p753_p0 = pnand %p752_p9, %p746_p10 }
  0x3e   : > { %756 = shalt.err (!%p753_p0)
}
  0x3f   : > { %s757_s29 = scalar_lea.vmem %s205_s9, 32  ;;  %s905_s5 = smov [#allocation5]  }
  0x40   : > { %p758_p1 = scmp.ne.s32.totalorder %s205_s9, %s757_s29  ;;  %s762_s25 = sshll.u32 %s905_s5, 4  ;;  %s763_s25 = int_to_ptr.vmem [resolvable:$false] %s762_s25 }
  0x41   : > { %s764_s7 = scalar_lea.vmem %s763_s25, 64  ;;  %p765_p6 = scmp.lt.s32.totalorder %s205_s9, %s763_s25 }
  0x42   : > { %p760_p11 = pnand %p758_p1, %p714_p3  ;;  %p766_p7 = scmp.lt.s32.totalorder %s764_s7, %s757_s29 }
  0x44   : > { %p761_p12 = pneg %p760_p11  ;;  %p767_p2 = por %p766_p7, %p765_p6 }
  0x46   : > { %p768_p4 = pnand %p767_p2, %p761_p12 }
  0x48   : > { %771 = shalt.err (!%p768_p4)
}
  0x49   : > { %658 = dma.hbm_to_vmem [thread:$0]  (!%p1015_p13), %s1062_s6, 32, %s205_s9, %s194_s8  }
  0x4a   : > { %p1298_p10 = scmp.ne.s32.totalorder %s1297_s13, 0 }
  0x4b   : > { %s1089_s10 = sand.u32 (!%p1298_p10), 1, %s894_s16   ;;  %p1299_p6 = scmp.ne.s32.totalorder (!%p1298_p10), %s1291_s26, 0 }
  0x4c   : > { %213 = sbr.rel (%p1298_p10) target bundleno = 521 (0x209), region = 28  ;;  %s1092_s12 = sshll.u32 (!%p1298_p10), %s1089_s10, 1 }
  0x4d   : > { %s216_s14 = scalar_lea.sflag (!%p1298_p10), [#allocation3], %s1089_s10  ;;  %s219_s30 = scalar_lea.vmem (!%p1298_p10), [#allocation2], %s1092_s12 }
  0x53   : > { %873 = dma.done.wait (%p1299_p6), %s216_s14, 32  }
  0x54   : > { %875 = vsyncadd (%p1299_p6), %s216_s14, 4294967264  ;;  %s225_s11 = scalar_lea.sflag [#allocation6], %s1089_s10  ;;  %s228_s13 = scalar_lea.vmem [#allocation5], %s1092_s12 }
  0x55   : > { %877 = dma.done.wait (%p1299_p6), %s225_s11, 32  }
  0x56   : > { %879 = vsyncadd (%p1299_p6), %s225_s11, 4294967264  ;;  %v321_v0 = vld [vmem:[%s228_s13] sm:$0x3]  ;;  %v268_v1 = vld [vmem:[%s219_s30] sm:$0x3]  ;;  %s906_s6 = smov 8   ;;  %v269_v18 = vlaneseq }
  0x57   : > { %323 = vrot.lane.b32.xlu0 %v321_v0, %s906_s6  ;;  %275 = vrot.lane.b32.xlu1 %v268_v1, %s906_s6  ;;  %s907_s9 = smov 120   ;;  %vm278_vm0 = vcmask 64512   ;;  %vm283_vm1 = vcmask 457728   ;;  %v331_v11 = vmul.f32 2.0, %v321_v0  ;;  %v285_v12 = vmul.f32 2.0, %v268_v1  ;;  %s908_s26 = smov 1  }
  0x58   : > { %s909_s8 = smov 127   ;;  %v270_v19 = vand.u32 127, %v269_v18  ;;  %vm293_vm2 = vcmask 7168   ;;  %vm301_vm3 = vcmask 515072   ;;  %s910_s22 = smov 64   ;;  %vm397_vm6 = vcmask 517120  }
  0x59   : > { %s1140_s23 = scalar_lea.vmem [#allocation8], %s1092_s12  ;;  %s1147_s29 = scalar_lea.vmem [#allocation7], %s1092_s12  ;;  %vm403_vm7 = vcmask 1041920  }
  0x5a   : > { %v271_v20 = vand.u32 7, %v270_v19  ;;  %s1152_s5 = scalar_lea.vmem [#allocation10], %s1092_s12  ;;  %s422_s25 = sand.u32 1, %s960_s19  }
  0x5b   : > { %327 = vrot.lane.b32.xlu0 %v321_v0, %s907_s9  ;;  %280 = vrot.lane.b32.xlu1 %v268_v1, %s907_s9  ;;  %s1158_s7 = sshll.u32 %s960_s19, 5  ;;  %s454_s14 = sshll.u32 %s1140_s23, 4  ;;  %s1167_s14 = int_to_ptr.vmem [resolvable:$true] %s454_s14 }
  0x5c   : > { %vm1106_vm4 = vcmp.ne.s32.totalorder %v271_v20, 0  ;;  %vm1111_vm5 = vcmp.ne.s32.totalorder %v271_v20, 7  ;;  %s1165_s13 = scalar_lea.hbm %s1286_s3, %s1158_s7  ;;  %s1171_s12 = scalar_lea.sflag [#allocation9], %s422_s25 }
  0x5d   : > { %s772_s19 = scalar_lea.vmem %s1167_s14, 32  ;;  %p1304_p3 = scmp.ne.s32.totalorder %s1292_s27, 0 }
  0x5e   : > { %p773_p13 = scmp.ne.s32.totalorder %s1167_s14, %s772_s19  ;;  %s911_s6 = smov [#allocation8]  }
  0x5f   : > { %s776_s9 = sshll.u32 %s911_s6, 4  ;;  %s777_s9 = int_to_ptr.vmem [resolvable:$false] %s776_s9 }
  0x60   : > { %p774_p7 = pnand %p773_p13, %p1304_p3  ;;  %p779_p8 = scmp.lt.s32.totalorder %s1167_s14, %s777_s9 }
  0x62   : > { %p775_p5 = pneg %p774_p7 }
  0xc9   : > { %v324_v2 = vpop.permute.xlu0 %323  ;;  %v276_v3 = vpop.permute.xlu1 %275 }
  0xca   : > { %v326_v6 = vsel %vm278_vm0, 0.0, %v324_v2  ;;  %v279_v8 = vsel %vm278_vm0, 0.0, %v276_v3 }
  0xcb   : > { %v332_v14 = vadd.f32 %v331_v11, %v326_v6  ;;  %v286_v15 = vadd.f32 %v285_v12, %v279_v8 }
  0xcd   : > { %v328_v4 = vpop.permute.xlu0 %327  ;;  %v281_v5 = vpop.permute.xlu1 %280 }
  0xce   : > { %v330_v7 = vsel %vm283_vm1, %v328_v4, 0.0  ;;  %v284_v9 = vsel %vm283_vm1, %v281_v5, 0.0 }
  0xcf   : > { %v334_v10 = vsub.f32 %v330_v7, %v326_v6  ;;  %v288_v13 = vsub.f32 %v284_v9, %v279_v8  ;;  %v333_v16 = vadd.f32 %v332_v14, %v330_v7  ;;  %v287_v17 = vadd.f32 %v286_v15, %v284_v9 }
  0xd1   : > { %347 = vrot.lane.b32.xlu0 %v334_v10, %s908_s26  ;;  %352 = vrot.lane.b32.xlu1 %v334_v10, %s909_s8  ;;  %v358_v25 = vmul.f32 2.0, %v334_v10  ;;  %v318_v35 = vmul.f32 2.0, %v288_v13 }
  0xd5   : > { %312 = vrot.lane.b32.xlu1 %v288_v13, %s909_s8  ;;  %307 = vrot.lane.b32.xlu0 %v288_v13, %s908_s26 }
  0xd9   : > { %341 = vrot.lane.b32.xlu1 %v333_v16, %s909_s8  ;;  %336 = vrot.lane.b32.xlu0 %v333_v16, %s908_s26 }
  0xdd   : > { %298 = vrot.lane.b32.xlu1 %v287_v17, %s909_s8  ;;  %290 = vrot.lane.b32.xlu0 %v287_v17, %s908_s26  ;;  %s778_s26 = scalar_lea.vmem %s777_s9, 64 }
  0xde   : > { %p780_p9 = scmp.lt.s32.totalorder %s778_s26, %s772_s19 }
  0xe0   : > { %p781_p0 = por %p780_p9, %p779_p8 }
  0xe2   : > { %p782_p1 = pnand %p781_p0, %p775_p5 }
 0x143   : > { %v348_v22 = vpop.permute.xlu0 %347  ;;  %v353_v23 = vpop.permute.xlu1 %352 }
 0x144   : > { %v350_v24 = vsel %vm293_vm2, 0.0, %v348_v22  ;;  %v355_v27 = vsel %vm301_vm3, %v353_v23, 0.0 }
 0x145   : > { %v351_v28 = vsel %vm1106_vm4, %v350_v24, 0.0  ;;  %v356_v30 = vsel %vm1111_vm5, %v355_v27, 0.0 }
 0x146   : > { %v359_v29 = vadd.f32 %v358_v25, %v351_v28 }
 0x147   : > { %v308_v31 = vpop.permute.xlu0 %307  ;;  %v313_v32 = vpop.permute.xlu1 %312 }
 0x148   : > { %v360_v33 = vadd.f32 %v359_v29, %v356_v30  ;;  %v310_v34 = vsel %vm293_vm2, 0.0, %v308_v31  ;;  %v315_v36 = vsel %vm301_vm3, %v313_v32, 0.0 }
 0x149   : > { %v311_v37 = vsel %vm1106_vm4, %v310_v34, 0.0  ;;  %v316_v38 = vsel %vm1111_vm5, %v315_v36, 0.0 }
 0x14a   : > { %v366_v39 = vand.u32 2147483647, %v360_v33  ;;  %v319_v40 = vadd.f32 %v318_v35, %v311_v37 }
 0x14b   : > { %v337_v41 = vpop.permute.xlu0 %336  ;;  %v342_v42 = vpop.permute.xlu1 %341 }
 0x14c   : > { %v367_v43 = vsub.f32 0.0, %v366_v39  ;;  %v320_v44 = vadd.f32 %v319_v40, %v316_v38  ;;  %v339_v45 = vsel %vm293_vm2, 0.0, %v337_v41  ;;  %v344_v46 = vsel %vm301_vm3, %v342_v42, 0.0 }
 0x14d   : > { %v340_v47 = vsel %vm1106_vm4, %v339_v45, 0.0  ;;  %v345_v48 = vsel %vm1111_vm5, %v344_v46, 0.0 }
 0x14e   : > { %v368_v49 = vmul.f32 1.442695, %v367_v43  ;;  %v357_v50 = vsub.f32 %v345_v48, %v340_v47  ;;  %400 = vrot.lane.b32.xlu0 %v320_v44, %s910_s22 }
 0x14f   : > { %v299_v51 = vpop.permute.xlu1 %298  ;;  %v291_v52 = vpop.permute.xlu0 %290 }
 0x150   : > { %708 = vpow2.f32 %v368_v49  ;;  %v361_v53 = vand.u32 2147483647, %v357_v50  ;;  %v302_v54 = vsel %vm301_vm3, %v299_v51, 0.0  ;;  %v294_v55 = vsel %vm293_vm2, 0.0, %v291_v52 }
 0x151   : > { %v305_v56 = vsel %vm1111_vm5, %v302_v54, 0.0  ;;  %v297_v57 = vsel %vm1106_vm4, %v294_v55, 0.0 }
 0x152   : > { %v362_v58 = vsub.f32 0.0, %v361_v53  ;;  %v317_v59 = vsub.f32 %v305_v56, %v297_v57 }
 0x154   : > { %v363_v60 = vmul.f32 1.442695, %v362_v58  ;;  %398 = vst.msk [vmem:[%s1140_s23] sm:$0x3] %vm397_vm6, %v317_v59 }
 0x156   : > { %710 = vpow2.f32 %v363_v60 }
 0x15a   : > { %v709_v61 = vpop.eup %708 }
 0x15b   : > { %v370_v62 = vmul.f32 0.4, %v709_v61 }
 0x15d   : > { %v384_v63 = vsub.f32 0.0, %v370_v62 }
 0x15f   : > { %v385_v0 = vmax.f32 %v384_v63, %v320_v44 }
 0x160   : > { %v711_v1 = vpop.eup %710 }
 0x161   : > { %v365_v2 = vmul.f32 0.4, %v711_v1  ;;  %v386_v3 = vmin.f32 %v370_v62, %v385_v0 }
 0x163   : > { %v371_v4 = vsub.f32 0.0, %v365_v2  ;;  %v387_v5 = vsub.f32 %v320_v44, %v386_v3 }
 0x165   : > { %v372_v6 = vmax.f32 %v371_v4, %v317_v59  ;;  %v388_v7 = vsub.f32 %v387_v5, %v320_v44 }
 0x167   : > { %v373_v8 = vmin.f32 %v365_v2, %v372_v6  ;;  %v389_v9 = vmul.f32 0.1, %v388_v7 }
 0x169   : > { %v374_v10 = vsub.f32 %v317_v59, %v373_v8  ;;  %v390_v11 = vsub.f32 %v320_v44, %v389_v9 }
 0x16b   : > { %v375_v12 = vsub.f32 %v374_v10, %v317_v59  ;;  %v391_v13 = vmax.f32 %v384_v63, %v390_v11 }
 0x16d   : > { %v376_v14 = vmul.f32 0.1, %v375_v12  ;;  %v392_v15 = vmin.f32 %v370_v62, %v391_v13 }
 0x16f   : > { %v377_v16 = vsub.f32 %v317_v59, %v376_v14  ;;  %v393_v17 = vsub.f32 %v390_v11, %v392_v15 }
 0x171   : > { %v378_v18 = vmax.f32 %v371_v4, %v377_v16  ;;  %v394_v19 = vsub.f32 %v393_v17, %v320_v44  ;;  %407 = vrot.lane.b32.xlu1 %v393_v17, %s910_s22 }
 0x173   : > { %v379_v20 = vmin.f32 %v365_v2, %v378_v18  ;;  %v395_v21 = vmul.f32 0.1, %v394_v19 }
 0x175   : > { %v380_v22 = vsub.f32 %v377_v16, %v379_v20  ;;  %v396_v23 = vadd.f32 %v395_v21, %v389_v9 }
 0x177   : > { %v381_v24 = vsub.f32 %v380_v22, %v317_v59  ;;  %413 = vrot.lane.b32.xlu0 %v396_v23, %s910_s22  ;;  %405 = vst.msk [vmem:[%s1147_s29] sm:$0x3] %vm397_vm6, %v380_v22 }
 0x179   : > { %v382_v25 = vmul.f32 0.1, %v381_v24 }
 0x17b   : > { %v383_v26 = vadd.f32 %v382_v25, %v376_v14 }
 0x17d   : > { %411 = vst.msk [vmem:[%s1152_s5] sm:$0x3] %vm397_vm6, %v383_v26 }
 0x1c0   : > { %v401_v27 = vpop.permute.xlu0 %400 }
 0x1c1   : > { %404 = vst.msk [vmem:[%s1140_s23] sm:$0x3] %vm403_vm7, %v401_v27 }
 0x1c2   : > { %785 = shalt.err (!%p782_p1)
}
 0x1c3   : > { %s786_s8 = scalar_lea.hbm %s1165_s13, 32  ;;  %s790_s25 = scalar_lea.hbm %s1286_s3, 64 }
 0x1c4   : > { %p787_p11 = scmp.ne.s32.totalorder %s1165_s13, %s786_s8  ;;  %p791_p4 = scmp.lt.u32.totalorder %s1165_s13, %s1286_s3 }
 0x1c5   : > { %p792_p10 = scmp.lt.u32.totalorder %s790_s25, %s786_s8  ;;  %p794_p13 = scmp.lt.u32.totalorder %s786_s8, %s1165_s13 }
 0x1c6   : > { %p788_p12 = pnand %p787_p11, %p1304_p3 }
 0x1c7   : > { %p793_p6 = por %p792_p10, %p791_p4 }
 0x1c8   : > { %p789_p2 = pneg %p788_p12 }
 0x1c9   : > { %p795_p7 = por %p794_p13, %p793_p6 }
 0x1cb   : > { %p796_p5 = pnand %p795_p7, %p789_p2 }
 0x1cd   : > { %799 = shalt.err (!%p796_p5)
}
 0x1ce   : > { %647 = dma.vmem_to_hbm [thread:$0]  (%p1304_p3), %s1167_s14, 32, %s1165_s13, %s1171_s12  }
 0x1cf   : > { %s441_s19 = sshll.u32 %s1147_s29, 4  ;;  %s1200_s26 = scalar_lea.hbm %s1285_s2, %s1158_s7  ;;  %s1202_s19 = int_to_ptr.vmem [resolvable:$true] %s441_s19 }
 0x1d0   : > { %s467_s8 = sshll.u32 %s1152_s5, 4  ;;  %s418_s22 = scalar_lea.sflag [#allocation4], %s1089_s10  ;;  %s1237_s8 = int_to_ptr.vmem [resolvable:$true] %s467_s8 }
 0x1d1   : > { %s800_s23 = scalar_lea.vmem %s1202_s19, 32  ;;  %s912_s14 = smov [#allocation7]  }
 0x1d2   : > { %p801_p8 = scmp.ne.s32.totalorder %s1202_s19, %s800_s23  ;;  %s804_s13 = sshll.u32 %s912_s14, 4  ;;  %s805_s13 = int_to_ptr.vmem [resolvable:$false] %s804_s13 }
 0x1d3   : > { %s806_s25 = scalar_lea.vmem %s805_s13, 64  ;;  %p807_p1 = scmp.lt.s32.totalorder %s1202_s19, %s805_s13 }
 0x1d4   : > { %p802_p9 = pnand %p801_p8, %p1304_p3  ;;  %p808_p11 = scmp.lt.s32.totalorder %s806_s25, %s800_s23 }
 0x1d6   : > { %p803_p0 = pneg %p802_p9  ;;  %p809_p12 = por %p808_p11, %p807_p1 }
 0x1d8   : > { %p810_p2 = pnand %p809_p12, %p803_p0 }
 0x1e3   : > { %v408_v28 = vpop.permute.xlu1 %407 }
 0x1e4   : > { %410 = vst.msk [vmem:[%s1147_s29] sm:$0x3] %vm403_vm7, %v408_v28 }
 0x1e5   : > { %813 = shalt.err (!%p810_p2)
}
 0x1e6   : > { %s814_s10 = scalar_lea.hbm %s1200_s26, 32  ;;  %s818_s11 = scalar_lea.hbm %s1285_s2, 64 }
 0x1e7   : > { %p815_p4 = scmp.ne.s32.totalorder %s1200_s26, %s814_s10  ;;  %p819_p13 = scmp.lt.u32.totalorder %s1200_s26, %s1285_s2 }
 0x1e8   : > { %p820_p7 = scmp.lt.u32.totalorder %s818_s11, %s814_s10  ;;  %p822_p8 = scmp.lt.u32.totalorder %s814_s10, %s1200_s26 }
 0x1e9   : > { %p816_p10 = pnand %p815_p4, %p1304_p3 }
 0x1ea   : > { %p821_p5 = por %p820_p7, %p819_p13 }
 0x1eb   : > { %p817_p6 = pneg %p816_p10 }
 0x1ec   : > { %p823_p9 = por %p822_p8, %p821_p5 }
 0x1ee   : > { %p824_p0 = pnand %p823_p9, %p817_p6 }
 0x1f0   : > { %827 = shalt.err (!%p824_p0)
}
 0x1f1   : > { %646 = dma.vmem_to_hbm [thread:$0]  (%p1304_p3), %s1202_s19, 32, %s1200_s26, %s418_s22   ;;  %v414_v29 = vpop.permute.xlu0 %413 }
 0x1f2   : > { %s1233_s13 = scalar_lea.hbm %s1287_s4, %s1158_s7  ;;  %416 = vst.msk [vmem:[%s1152_s5] sm:$0x3] %vm403_vm7, %v414_v29  ;;  %s828_s25 = scalar_lea.vmem %s1237_s8, 32 }
 0x1f3   : > { %p829_p1 = scmp.ne.s32.totalorder %s1237_s8, %s828_s25  ;;  %s913_s19 = smov [#allocation10]  }
 0x1f4   : > { %s832_s26 = sshll.u32 %s913_s19, 4  ;;  %s833_s26 = int_to_ptr.vmem [resolvable:$false] %s832_s26 }
 0x1f5   : > { %p830_p11 = pnand %p829_p1, %p1304_p3  ;;  %s834_s22 = scalar_lea.vmem %s833_s26, 64 }
 0x1f6   : > { %p835_p2 = scmp.lt.s32.totalorder %s1237_s8, %s833_s26  ;;  %p836_p4 = scmp.lt.s32.totalorder %s834_s22, %s828_s25 }
 0x1f7   : > { %p831_p12 = pneg %p830_p11 }
 0x1f8   : > { %p837_p10 = por %p836_p4, %p835_p2 }
 0x1fa   : > { %p838_p6 = pnand %p837_p10, %p831_p12 }
 0x1fc   : > { %841 = shalt.err (!%p838_p6)
}
 0x1fd   : > { %s842_s5 = scalar_lea.hbm %s1233_s13, 32  ;;  %s846_s29 = scalar_lea.hbm %s1287_s4, 64 }
 0x1fe   : > { %p843_p13 = scmp.ne.s32.totalorder %s1233_s13, %s842_s5  ;;  %p847_p8 = scmp.lt.u32.totalorder %s1233_s13, %s1287_s4 }
 0x1ff   : > { %p848_p9 = scmp.lt.u32.totalorder %s846_s29, %s842_s5  ;;  %p850_p1 = scmp.lt.u32.totalorder %s842_s5, %s1233_s13 }
 0x200   : > { %p844_p7 = pnand %p843_p13, %p1304_p3 }
 0x201   : > { %p849_p0 = por %p848_p9, %p847_p8 }
 0x202   : > { %p845_p5 = pneg %p844_p7 }
 0x203   : > { %p851_p11 = por %p850_p1, %p849_p0 }
 0x205   : > { %p852_p12 = pnand %p851_p11, %p845_p5 }
 0x207   : > { %855 = shalt.err (!%p852_p12)
}
 0x208   : > { %648 = dma.vmem_to_hbm [thread:$0]  (%p1304_p3), %s1237_s8, 32, %s1233_s13, %s1171_s12  }
 0x209 PF: > { %s479_s6 = sand.u32 1, %s890_s15   ;;  %p1305_p2 = scmp.ne.s32.totalorder %s1293_s28, 0 }
 0x20a   : > { %p1306_p4 = scmp.ge.s32.totalorder %s902_s18, 2  ;;  %s480_s9 = scalar_lea.sflag [#allocation4], %s479_s6 }
 0x20c   : > { %p660_p10 = pnand %p1306_p4, %p1305_p2 }
 0x20e   : > { %881 = dma.done.wait (!%p660_p10), %s480_s9, 32  }
 0x20f   : > { %883 = vsyncadd (!%p660_p10), %s480_s9, 4294967264  ;;  %s488_s23 = sand.u32 1, %s621_s20  }
 0x210   : > { %s489_s14 = scalar_lea.sflag [#allocation9], %s488_s23 }
 0x211   : > { %885 = dma.done.wait (!%p660_p10), %s489_s14, 64  }
 0x212   : > { %887 = vsyncadd (!%p660_p10), %s489_s14, 4294967232  ;;  %p24_p3 = scmp.ge.s32.totalorder %s964_s21, 4   ;;  %s1307_s15 = smov %s894_s16 }
 0x213   : > { %s1308_s16 = smov %s898_s17  ;;  %s1309_s17 = smov %s976_s24 }
 0x214   : > { %s1310_s18 = smov %s964_s21  ;;  %26 = sbr.rel (!%p24_p3) target bundleno = 9 (0x9), region = 118 }
 0x21b   :  { %503 = vsyncpa [#allocation3], 1 }
 0x21c   :  { %505 = vsyncpa [#allocation3 + $0x1], 1 }
 0x21d   :  { %506 = vsyncpa [#allocation6], 1 }
 0x21e   :  { %508 = vsyncpa [#allocation6 + $0x1], 1 }
 0x21f   :  { %509 = vsyncpa [#allocation4], 1 }
 0x220   :  { %511 = vsyncpa [#allocation4 + $0x1], 1 }
 0x221   :  { %512 = vsyncpa [#allocation9], 1 }
 0x222   :  { %514 = vsyncpa [#allocation9 + $0x1], 1 }

</bundles_post_ra>
